<compile_context>
chip_gen: v7x
topology: tpu7x:2x2x1
jax: 0.10.0
libtpu: 0.0.40
codegen_flags: <defaults>
</compile_context>

<pallas_src>
import jax
import jax.numpy as jnp
from jax.experimental import pallas as pl
from jax.experimental.pallas import tpu as pltpu


def node_rk4_kernel(x_ref, w1_ref, b1_ref, w2_ref, b2_ref, o_ref):
    """Full NODE.forward for one lane-dense batch tile.

    x_ref  : (3, TB)  inputs, features on sublanes, batch on lanes
    w1_ref : (H, 3)   fc1.weight (PyTorch layout)
    b1_ref : (H, 1)   fc1.bias as a column
    w2_ref : (H, 1)   fc2.weight.T as a column
    b2_ref : (1, 1)   fc2.bias
    o_ref  : (1, TB)  output y1
    """
    x = x_ref[...]
    w1 = w1_ref[...]
    b1 = b1_ref[...]
    w2 = w2_ref[...]
    b2 = b2_ref[...]

    # dt is fixed to the module's default (forward() never overrides it).
    dt = 0.25
    half_dt = 0.5 * dt

    y0 = x[0:1, :]                        # (1, TB)
    w1c0 = w1[:, 0:1]                     # (H, 1)
    # Tiny (H,1) pre-scaled rank-1 columns, hoisted off the serial RK4 chain.
    w1c0_h = half_dt * w1c0               # (H, 1)
    w1c0_d = dt * w1c0                    # (H, 1)

    # Hoisted: the full pre-activation at the base point y0 (the y rows, the
    # bias, AND the w1c0*y0 term) is identical across all 4 RK4 evaluations;
    # only the y0-increment (a scaled k) changes.
    base2 = (w1c0 * y0
             + w1[:, 1:2] * x[1:2, :]
             + w1[:, 2:3] * x[2:3, :]
             + b1)                        # (H, TB)

    def g(pre):
        # ReLU on VPU, then fc2 as a sublane (axis=0) reduce over H (XLU).
        h = jnp.maximum(pre, 0.0)                             # (H, TB)
        return jnp.sum(h * w2, axis=0, keepdims=True) + b2    # (1, TB)

    k1 = g(base2)
    k2 = g(base2 + w1c0_h * k1)
    k3 = g(base2 + w1c0_h * k2)
    k4 = g(base2 + w1c0_d * k3)

    dy = (k1 + 2.0 * (k2 + k3) + k4) * (dt * (1.0 / 6.0))
    o_ref[...] = y0 + dy


def node_forward(x, w1, b1, w2, b2, tile_b=32768):
    """x: (B, 3) f32; w1: (H, 3); b1: (H,); w2: (1, H); b2: (1,).

    Returns y1: (B, 1) f32.
    """
    B = x.shape[0]
    H = w1.shape[0]

    # Layout plumbing in the wrapper (single pass, no extra pad pass):
    # batch onto lanes.  Upstream producers should hand us (3, B) directly.
    x_t = jnp.transpose(x).astype(jnp.float32)          # (3, B)
    w1_f = w1.astype(jnp.float32)                        # (H, 3)
    b1_c = b1.reshape(H, 1).astype(jnp.float32)          # (H, 1)
    w2_c = w2.reshape(1, H).T.astype(jnp.float32)        # (H, 1)
    b2_c = b2.reshape(1, 1).astype(jnp.float32)          # (1, 1)

    # Tile the batch (lane) axis.  Lane-dense tiles (multiple of 128) for
    # large B; split moderately sized batches into 2 tiles so both v7x
    # TensorCores get work; tiny batches use one whole-array tile (block ==
    # full dim satisfies the (8,128) rule).  The last partial block reads a
    # few out-of-bounds lanes; those lanes never mix with valid lanes and
    # their output is discarded by the edge-block writeback.
    if B <= tile_b:
        if B >= 256:
            tile_b = pl.cdiv(pl.cdiv(B, 2), 128) * 128   # 2 lane-dense tiles
        else:
            tile_b = B                                   # single whole tile
    n_tiles = pl.cdiv(B, tile_b)

    out = pl.pallas_call(
        node_rk4_kernel,
        out_shape=jax.ShapeDtypeStruct((1, B), jnp.float32),
        grid_spec=pltpu.PrefetchScalarGridSpec(
            num_scalar_prefetch=0,
            grid=(n_tiles,),
            in_specs=[
                pl.BlockSpec((3, tile_b), lambda i: (0, i)),   # x tile
                pl.BlockSpec((H, 3), lambda i: (0, 0)),        # fc1.weight (resident)
                pl.BlockSpec((H, 1), lambda i: (0, 0)),        # fc1.bias
                pl.BlockSpec((H, 1), lambda i: (0, 0)),        # fc2.weight.T
                pl.BlockSpec((1, 1), lambda i: (0, 0)),        # fc2.bias
            ],
            out_specs=pl.BlockSpec((1, tile_b), lambda i: (0, i)),
        ),
        compiler_params=pltpu.CompilerParams(
            dimension_semantics=("parallel",),
            vmem_limit_bytes=64 * 1024 * 1024,   # v5e's 16 MiB default is too low
        ),
    )(x_t, w1_f, b1_c, w2_c, b2_c)

    return jnp.transpose(out)    # (B, 1)


def node_forward_ref(x, w1, b1, w2, b2):
    """Pure-JAX reference matching the PyTorch module semantics."""
    def _func(c):
        h = jnp.maximum(c @ w1.T + b1, 0.0)
        return h @ w2.T + b2

    y0 = x[:, 0:1]
    y = x[:, 1:3]
    dt = 0.25
    half_dt = 0.5 * dt
    k1 = _func(jnp.concatenate([y0, y], axis=1))
    k2 = _func(jnp.concatenate([y0 + half_dt * k1, y], axis=1))
    k3 = _func(jnp.concatenate([y0 + half_dt * k2, y], axis=1))
    k4 = _func(jnp.concatenate([y0 + dt * k3, y], axis=1))
    dy = (k1 + 2.0 * (k2 + k3) + k4) * dt / 6.0
    return y0 + dy


if __name__ == "__main__":
    num_neuron = 8   # matches NODE(num_neuron=8)

    key = jax.random.PRNGKey(0)
    kx, kw1, kb1, kw2, kb2, kx2 = jax.random.split(key, 6)

    # Deterministic synthetic parameters (fc1: Linear(3, H); fc2: Linear(H, 1)).
    w1 = jax.random.normal(kw1, (num_neuron, 3), dtype=jnp.float32) * 0.5   # fc1.weight
    b1 = jax.random.normal(kb1, (num_neuron,), dtype=jnp.float32) * 0.1     # fc1.bias
    w2 = jax.random.normal(kw2, (1, num_neuron), dtype=jnp.float32) * 0.5   # fc2.weight
    b2 = jax.random.normal(kb2, (1,), dtype=jnp.float32) * 0.1              # fc2.bias

    # Small batch: single whole-array tile path.
    batch = 8
    x = jax.random.normal(kx, (batch, 3), dtype=jnp.float32)
    y1 = jax.block_until_ready(node_forward(x, w1, b1, w2, b2))
    y1_ref = node_forward_ref(x, w1, b1, w2, b2)
    assert y1.shape == (batch, 1)
    assert jnp.allclose(y1, y1_ref, atol=1e-5, rtol=1e-5), (y1, y1_ref)

    # Larger (still small) batch: exercises the tiled grid + partial last
    # block (300 is not a multiple of 128; OOB lanes are discarded).
    batch2 = 300
    x2 = jax.random.normal(kx2, (batch2, 3), dtype=jnp.float32)
    y2 = jax.block_until_ready(node_forward(x2, w1, b1, w2, b2, tile_b=128))
    y2_ref = node_forward_ref(x2, w1, b1, w2, b2)
    assert y2.shape == (batch2, 1)
    assert jnp.allclose(y2, y2_ref, atol=1e-5, rtol=1e-5), (y2, y2_ref)

    # Mid-size batch: exercises the 2-tile (dual TensorCore) split path.
    batch3 = 512
    x3 = jax.random.normal(kx2, (batch3, 3), dtype=jnp.float32)
    y3 = jax.block_until_ready(node_forward(x3, w1, b1, w2, b2))
    y3_ref = node_forward_ref(x3, w1, b1, w2, b2)
    assert y3.shape == (batch3, 1)
    assert jnp.allclose(y3, y3_ref, atol=1e-5, rtol=1e-5), (y3, y3_ref)

    print("KERNEL_OK")
</pallas_src>

<mosaic_0001>
module attributes {stable_mosaic.version = 11 : i64} {
  func.func @node_rk4_kernel(%arg0: i32, %arg1: memref<3x8xf32, #tpu.memory_space<vmem>>, %arg2: memref<8x3xf32, #tpu.memory_space<vmem>>, %arg3: memref<8x1xf32, #tpu.memory_space<vmem>>, %arg4: memref<8x1xf32, #tpu.memory_space<vmem>>, %arg5: memref<1x1xf32, #tpu.memory_space<vmem>>, %arg6: memref<1x8xf32, #tpu.memory_space<vmem>>) attributes {dimension_semantics = [#tpu.dimension_semantics<parallel>], iteration_bounds = array<i64: 1>, scalar_prefetch = 0 : i64, scratch_operands = 0 : i64, tpu.core_type = #tpu.core_type<tc>, window_params = [{transform_indices = @transform_0, window_bounds = array<i64: 3, 8>}, {pipeline_mode = #tpu.pipeline_mode<synchronous>, transform_indices = @transform_1, window_bounds = array<i64: 8, 3>}, {pipeline_mode = #tpu.pipeline_mode<synchronous>, transform_indices = @transform_2, window_bounds = array<i64: 8, 1>}, {pipeline_mode = #tpu.pipeline_mode<synchronous>, transform_indices = @transform_3, window_bounds = array<i64: 8, 1>}, {pipeline_mode = #tpu.pipeline_mode<synchronous>, transform_indices = @transform_4, window_bounds = array<i64: 1, 1>}, {transform_indices = @transform_5, window_bounds = array<i64: 1, 8>}]} {
    %c0 = arith.constant 0 : index
    %c0_0 = arith.constant 0 : index
    %0 = vector.load %arg1[%c0, %c0_0] : memref<3x8xf32, #tpu.memory_space<vmem>>, vector<3x8xf32>
    %c0_1 = arith.constant 0 : index
    %c0_2 = arith.constant 0 : index
    %1 = vector.load %arg2[%c0_1, %c0_2] : memref<8x3xf32, #tpu.memory_space<vmem>>, vector<8x3xf32>
    %c0_3 = arith.constant 0 : index
    %c0_4 = arith.constant 0 : index
    %2 = vector.load %arg3[%c0_3, %c0_4] : memref<8x1xf32, #tpu.memory_space<vmem>>, vector<8x1xf32>
    %c0_5 = arith.constant 0 : index
    %c0_6 = arith.constant 0 : index
    %3 = vector.load %arg4[%c0_5, %c0_6] : memref<8x1xf32, #tpu.memory_space<vmem>>, vector<8x1xf32>
    %c0_7 = arith.constant 0 : index
    %c0_8 = arith.constant 0 : index
    %4 = vector.load %arg5[%c0_7, %c0_8] : memref<1x1xf32, #tpu.memory_space<vmem>>, vector<1x1xf32>
    %5 = vector.extract_strided_slice %0 {offsets = [0, 0], sizes = [1, 8], strides = [1, 1]} : vector<3x8xf32> to vector<1x8xf32>
    %6 = vector.extract_strided_slice %1 {offsets = [0, 0], sizes = [8, 1], strides = [1, 1]} : vector<8x3xf32> to vector<8x1xf32>
    %cst = arith.constant 1.250000e-01 : f32
    %7 = vector.broadcast %cst : f32 to vector<8x1xf32>
    %8 = arith.mulf %7, %6 : vector<8x1xf32>
    %cst_9 = arith.constant 2.500000e-01 : f32
    %9 = vector.broadcast %cst_9 : f32 to vector<8x1xf32>
    %10 = arith.mulf %9, %6 : vector<8x1xf32>
    %11 = vector.broadcast %6 : vector<8x1xf32> to vector<8x8xf32>
    %12 = vector.broadcast %5 : vector<1x8xf32> to vector<8x8xf32>
    %13 = arith.mulf %11, %12 : vector<8x8xf32>
    %14 = vector.extract_strided_slice %1 {offsets = [0, 1], sizes = [8, 1], strides = [1, 1]} : vector<8x3xf32> to vector<8x1xf32>
    %15 = vector.extract_strided_slice %0 {offsets = [1, 0], sizes = [1, 8], strides = [1, 1]} : vector<3x8xf32> to vector<1x8xf32>
    %16 = vector.broadcast %14 : vector<8x1xf32> to vector<8x8xf32>
    %17 = vector.broadcast %15 : vector<1x8xf32> to vector<8x8xf32>
    %18 = arith.mulf %16, %17 : vector<8x8xf32>
    %19 = arith.addf %13, %18 : vector<8x8xf32>
    %20 = vector.extract_strided_slice %1 {offsets = [0, 2], sizes = [8, 1], strides = [1, 1]} : vector<8x3xf32> to vector<8x1xf32>
    %21 = vector.extract_strided_slice %0 {offsets = [2, 0], sizes = [1, 8], strides = [1, 1]} : vector<3x8xf32> to vector<1x8xf32>
    %22 = vector.broadcast %20 : vector<8x1xf32> to vector<8x8xf32>
    %23 = vector.broadcast %21 : vector<1x8xf32> to vector<8x8xf32>
    %24 = arith.mulf %22, %23 : vector<8x8xf32>
    %25 = arith.addf %19, %24 : vector<8x8xf32>
    %26 = vector.broadcast %2 : vector<8x1xf32> to vector<8x8xf32>
    %27 = arith.addf %25, %26 : vector<8x8xf32>
    %cst_10 = arith.constant 0.000000e+00 : f32
    %28 = vector.broadcast %cst_10 : f32 to vector<8x8xf32>
    %29 = arith.maximumf %27, %28 : vector<8x8xf32>
    %30 = vector.broadcast %3 : vector<8x1xf32> to vector<8x8xf32>
    %31 = arith.mulf %29, %30 : vector<8x8xf32>
    %cst_11 = arith.constant dense<0.000000e+00> : vector<8xf32>
    %32 = vector.multi_reduction <add>, %31, %cst_11 [0] : vector<8x8xf32> to vector<8xf32>
    %33 = vector.shape_cast %32 : vector<8xf32> to vector<1x8xf32>
    %34 = vector.broadcast %4 : vector<1x1xf32> to vector<1x8xf32>
    %35 = arith.addf %33, %34 : vector<1x8xf32>
    %36 = vector.broadcast %8 : vector<8x1xf32> to vector<8x8xf32>
    %37 = vector.broadcast %35 : vector<1x8xf32> to vector<8x8xf32>
    %38 = arith.mulf %36, %37 : vector<8x8xf32>
    %39 = arith.addf %27, %38 : vector<8x8xf32>
    %cst_12 = arith.constant 0.000000e+00 : f32
    %40 = vector.broadcast %cst_12 : f32 to vector<8x8xf32>
    %41 = arith.maximumf %39, %40 : vector<8x8xf32>
    %42 = vector.broadcast %3 : vector<8x1xf32> to vector<8x8xf32>
    %43 = arith.mulf %41, %42 : vector<8x8xf32>
    %cst_13 = arith.constant dense<0.000000e+00> : vector<8xf32>
    %44 = vector.multi_reduction <add>, %43, %cst_13 [0] : vector<8x8xf32> to vector<8xf32>
    %45 = vector.shape_cast %44 : vector<8xf32> to vector<1x8xf32>
    %46 = vector.broadcast %4 : vector<1x1xf32> to vector<1x8xf32>
    %47 = arith.addf %45, %46 : vector<1x8xf32>
    %48 = vector.broadcast %8 : vector<8x1xf32> to vector<8x8xf32>
    %49 = vector.broadcast %47 : vector<1x8xf32> to vector<8x8xf32>
    %50 = arith.mulf %48, %49 : vector<8x8xf32>
    %51 = arith.addf %27, %50 : vector<8x8xf32>
    %cst_14 = arith.constant 0.000000e+00 : f32
    %52 = vector.broadcast %cst_14 : f32 to vector<8x8xf32>
    %53 = arith.maximumf %51, %52 : vector<8x8xf32>
    %54 = vector.broadcast %3 : vector<8x1xf32> to vector<8x8xf32>
    %55 = arith.mulf %53, %54 : vector<8x8xf32>
    %cst_15 = arith.constant dense<0.000000e+00> : vector<8xf32>
    %56 = vector.multi_reduction <add>, %55, %cst_15 [0] : vector<8x8xf32> to vector<8xf32>
    %57 = vector.shape_cast %56 : vector<8xf32> to vector<1x8xf32>
    %58 = vector.broadcast %4 : vector<1x1xf32> to vector<1x8xf32>
    %59 = arith.addf %57, %58 : vector<1x8xf32>
    %60 = vector.broadcast %10 : vector<8x1xf32> to vector<8x8xf32>
    %61 = vector.broadcast %59 : vector<1x8xf32> to vector<8x8xf32>
    %62 = arith.mulf %60, %61 : vector<8x8xf32>
    %63 = arith.addf %27, %62 : vector<8x8xf32>
    %cst_16 = arith.constant 0.000000e+00 : f32
    %64 = vector.broadcast %cst_16 : f32 to vector<8x8xf32>
    %65 = arith.maximumf %63, %64 : vector<8x8xf32>
    %66 = vector.broadcast %3 : vector<8x1xf32> to vector<8x8xf32>
    %67 = arith.mulf %65, %66 : vector<8x8xf32>
    %cst_17 = arith.constant dense<0.000000e+00> : vector<8xf32>
    %68 = vector.multi_reduction <add>, %67, %cst_17 [0] : vector<8x8xf32> to vector<8xf32>
    %69 = vector.shape_cast %68 : vector<8xf32> to vector<1x8xf32>
    %70 = vector.broadcast %4 : vector<1x1xf32> to vector<1x8xf32>
    %71 = arith.addf %69, %70 : vector<1x8xf32>
    %72 = arith.addf %47, %59 : vector<1x8xf32>
    %cst_18 = arith.constant 2.000000e+00 : f32
    %73 = vector.broadcast %cst_18 : f32 to vector<1x8xf32>
    %74 = arith.mulf %73, %72 : vector<1x8xf32>
    %75 = arith.addf %35, %74 : vector<1x8xf32>
    %76 = arith.addf %75, %71 : vector<1x8xf32>
    %cst_19 = arith.constant 0.0416666679 : f32
    %77 = vector.broadcast %cst_19 : f32 to vector<1x8xf32>
    %78 = arith.mulf %76, %77 : vector<1x8xf32>
    %79 = arith.addf %5, %78 : vector<1x8xf32>
    %c0_20 = arith.constant 0 : index
    %c0_21 = arith.constant 0 : index
    %80 = vector.load %arg6[%c0_20, %c0_21] : memref<1x8xf32, #tpu.memory_space<vmem>>, vector<1x8xf32>
    tpu.vector_store %arg6[%c0_20, %c0_21], %79 {strides = array<i32>} : memref<1x8xf32, #tpu.memory_space<vmem>>, vector<1x8xf32>,
    return
  }
  func.func @transform_0(%arg0: i32) -> (i32, i32) {
    %c0_i32 = arith.constant 0 : i32
    %c0_i32_0 = arith.constant 0 : i32
    return %c0_i32, %arg0 : i32, i32
  }
  func.func @transform_1(%arg0: i32) -> (i32, i32) {
    %c0_i32 = arith.constant 0 : i32
    %c0_i32_0 = arith.constant 0 : i32
    %c0_i32_1 = arith.constant 0 : i32
    return %c0_i32, %c0_i32_0 : i32, i32
  }
  func.func @transform_2(%arg0: i32) -> (i32, i32) {
    %c0_i32 = arith.constant 0 : i32
    %c0_i32_0 = arith.constant 0 : i32
    %c0_i32_1 = arith.constant 0 : i32
    return %c0_i32, %c0_i32_0 : i32, i32
  }
  func.func @transform_3(%arg0: i32) -> (i32, i32) {
    %c0_i32 = arith.constant 0 : i32
    %c0_i32_0 = arith.constant 0 : i32
    %c0_i32_1 = arith.constant 0 : i32
    return %c0_i32, %c0_i32_0 : i32, i32
  }
  func.func @transform_4(%arg0: i32) -> (i32, i32) {
    %c0_i32 = arith.constant 0 : i32
    %c0_i32_0 = arith.constant 0 : i32
    %c0_i32_1 = arith.constant 0 : i32
    return %c0_i32, %c0_i32_0 : i32, i32
  }
  func.func @transform_5(%arg0: i32) -> (i32, i32) {
    %c0_i32 = arith.constant 0 : i32
    %c0_i32_0 = arith.constant 0 : i32
    return %c0_i32, %arg0 : i32, i32
  }
}

</mosaic_0001>

<bundles_post_ra>
// kernel: tpu_custom_call.1
= control target key start
LH: loop header
LB: loop body
LE: loop exit
PB: predicated region body
PF: predicated region fallthrough
CT: control target
= control target key end

     0   :  { %s451_s0 = inlined_call_operand.hbm [shape: f32[3,8], index: 0, kind: input, shape index: {}]   ;;  %s452_s1 = inlined_call_operand.hbm [shape: f32[8,3], index: 1, kind: input, shape index: {}]   ;;  %s453_s2 = inlined_call_operand.hbm [shape: f32[8,1], index: 2, kind: input, shape index: {}]   ;;  %s454_s3 = inlined_call_operand.hbm [shape: f32[8,1], index: 3, kind: input, shape index: {}]   ;;  %s455_s4 = inlined_call_operand.<no memory space> [shape: f32[1,1], index: 4, kind: input, shape index: {}]   ;;  %s456_s5 = inlined_call_operand.hbm [shape: f32[1,8], index: 5, kind: output, shape index: {}]  }
   0x1   :  { %v10_v0 = vstv %s455_s4 }
   0x2   :  { %11 = vst [vmem:[#allocation2] sm:$0x1] %v10_v0 }
   0x3   :  { %12 = vsyncpa [#allocation4], 0 }
   0x4   :  { %13 = vsyncpa [#allocation7], 0 }
   0x5   :  { %14 = vsyncpa [#allocation10], 0 }
   0x6   :  { %15 = vsyncpa [#allocation5], 0  ;;  %s340_s20 = smov [#allocation6]   ;;  %s341_s22 = smov [#allocation3]  }
   0x7   :  { %s32_s21 = sshll.u32 %s340_s20, 4  ;;  %s22_s23 = sshll.u32 %s341_s22, 4  ;;  %s33_s21 = int_to_ptr.vmem [resolvable:$true] %s32_s21  ;;  %s23_s23 = int_to_ptr.vmem [resolvable:$true] %s22_s23 }
   0x8   :  { %s222_s26 = scalar_lea.hbm %s452_s1, 128 }
   0x9   :  { %p223_p0 = scmp.ne.s32.totalorder %s452_s1, %s222_s26  ;;  %p226_p1 = scmp.lt.u32.totalorder %s222_s26, %s452_s1 }
   0xb   :  { %p228_p2 = pnand %p226_p1, %p223_p0 }
   0xd   :  { %231 = shalt.err (!%p228_p2)
}
   0xe   :  { %s232_s30 = scalar_lea.vmem %s33_s21, 128  ;;  %p237_p4 = scmp.lt.s32.totalorder %s33_s21, %s33_s21 }
   0xf   :  { %p233_p3 = scmp.ne.s32.totalorder %s33_s21, %s232_s30  ;;  %p238_p5 = scmp.lt.s32.totalorder %s232_s30, %s232_s30 }
  0x11   :  { %p239_p6 = por %p238_p5, %p237_p4 }
  0x13   :  { %p240_p7 = pnand %p239_p6, %p233_p3 }
  0x15   :  { %243 = shalt.err (!%p240_p7)
}
  0x16   :  { %35 = dma.hbm_to_vmem [thread:$0]  %s452_s1, 128, %s33_s21, [#allocation7]  }
  0x17   :  { %s244_s10 = scalar_lea.hbm %s451_s0, 64 }
  0x18   :  { %p245_p8 = scmp.ne.s32.totalorder %s451_s0, %s244_s10  ;;  %p248_p9 = scmp.lt.u32.totalorder %s244_s10, %s451_s0 }
  0x1a   :  { %p250_p10 = pnand %p248_p9, %p245_p8 }
  0x1c   :  { %253 = shalt.err (!%p250_p10)
}
  0x1d   :  { %s254_s15 = scalar_lea.vmem %s23_s23, 64  ;;  %p259_p12 = scmp.lt.s32.totalorder %s23_s23, %s23_s23 }
  0x1e   :  { %p255_p11 = scmp.ne.s32.totalorder %s23_s23, %s254_s15  ;;  %p260_p13 = scmp.lt.s32.totalorder %s254_s15, %s254_s15 }
  0x20   :  { %p261_p0 = por %p260_p13, %p259_p12 }
  0x22   :  { %p262_p1 = pnand %p261_p0, %p255_p11 }
  0x24   :  { %265 = shalt.err (!%p262_p1)
}
  0x25   :  { %25 = dma.hbm_to_vmem [thread:$0]  %s451_s0, 64, %s23_s23, [#allocation4]  }
  0x26   :  { %s342_s17 = smov [#allocation8]   ;;  %s343_s19 = smov [#allocation9]  }
  0x27   :  { %s42_s18 = sshll.u32 %s342_s17, 4  ;;  %s52_s20 = sshll.u32 %s343_s19, 4  ;;  %s43_s18 = int_to_ptr.vmem [resolvable:$true] %s42_s18  ;;  %s53_s20 = int_to_ptr.vmem [resolvable:$true] %s52_s20 }
  0x28   :  { %s266_s24 = scalar_lea.hbm %s453_s2, 128 }
  0x29   :  { %p267_p2 = scmp.ne.s32.totalorder %s453_s2, %s266_s24  ;;  %p270_p3 = scmp.lt.u32.totalorder %s266_s24, %s453_s2 }
  0x2b   :  { %p272_p4 = pnand %p270_p3, %p267_p2 }
  0x2d   :  { %275 = shalt.err (!%p272_p4)
}
  0x2e   :  { %s276_s0 = scalar_lea.vmem %s43_s18, 128  ;;  %p281_p6 = scmp.lt.s32.totalorder %s43_s18, %s43_s18 }
  0x2f   :  { %p277_p5 = scmp.ne.s32.totalorder %s43_s18, %s276_s0  ;;  %p282_p7 = scmp.lt.s32.totalorder %s276_s0, %s276_s0 }
  0x31   :  { %p283_p8 = por %p282_p7, %p281_p6 }
  0x33   :  { %p284_p9 = pnand %p283_p8, %p277_p5 }
  0x35   :  { %287 = shalt.err (!%p284_p9)
}
  0x36   :  { %45 = dma.hbm_to_vmem [thread:$0]  %s453_s2, 128, %s43_s18, [#allocation7]  }
  0x37   :  { %s288_s6 = scalar_lea.hbm %s454_s3, 128 }
  0x38   :  { %p289_p10 = scmp.ne.s32.totalorder %s454_s3, %s288_s6  ;;  %p292_p11 = scmp.lt.u32.totalorder %s288_s6, %s454_s3 }
  0x3a   :  { %p294_p12 = pnand %p292_p11, %p289_p10 }
  0x3c   :  { %297 = shalt.err (!%p294_p12)
}
  0x3d   :  { %s298_s11 = scalar_lea.vmem %s53_s20, 128  ;;  %p303_p0 = scmp.lt.s32.totalorder %s53_s20, %s53_s20 }
  0x3e   :  { %p299_p13 = scmp.ne.s32.totalorder %s53_s20, %s298_s11  ;;  %p304_p1 = scmp.lt.s32.totalorder %s298_s11, %s298_s11 }
  0x40   :  { %p305_p2 = por %p304_p1, %p303_p0 }
  0x42   :  { %p306_p3 = pnand %p305_p2, %p299_p13 }
  0x44   :  { %309 = shalt.err (!%p306_p3)
}
  0x45   :  { %55 = dma.hbm_to_vmem [thread:$0]  %s454_s3, 128, %s53_s20, [#allocation10]  }
  0x46   :  { %332 = dma.done.wait [#allocation4], 64  }
  0x47   :  { %333 = vsyncadd [#allocation4], 4294967232 }
  0x48   :  { %334 = dma.done.wait [#allocation7], 256  }
  0x49   :  { %335 = vsyncadd [#allocation7], 4294967040 }
  0x4a   :  { %336 = dma.done.wait [#allocation10], 128  }
  0x4b   :  { %337 = vsyncadd [#allocation10], 4294967168  ;;  %v344_v1 = vmov 2   ;;  %v345_v2 = vmov 0   ;;  %v71_v3 = vld [vmem:[#allocation6] sm:$0xff]  ;;  %v72_v4 = vld [vmem:[#allocation8] sm:$0xff]  ;;  %v82_v10 = vlaneseq }
  0x4c   :  { %219 = vset.pattern.permute.xlu1 %v344_v1  ;;  %217 = vset.pattern.permute.xlu0 %v345_v2  ;;  %v346_v5 = vmov 1   ;;  %v73_v6 = vld [vmem:[#allocation9] sm:$0xff]  ;;  %v74_v7 = vld [vmem:[#allocation2] sm:$0x1]  ;;  %v75_v8 = vmul.f32 0.125, %v71_v3  ;;  %v76_v9 = vmul.f32 0.25, %v71_v3 }
  0x4d   :  { %98 = vperm.xlu1 %219, %v71_v3   ;;  %79 = vperm.xlu0 %217, %v71_v3   ;;  %v83_v11 = vshrl.u32 %v82_v10, 7  ;;  %v429_v15 = vld [vmem:[#allocation3] sm:$0x7]  ;;  %vm120_vm0 = vcmask 64512   ;;  %s347_s3 = smov [#allocation11]   ;;  %vm190_vm1 = vcmask 57344  }
  0x4e   :  { %s198_s13 = sshll.u32 %s347_s3, 4  ;;  %s199_s13 = int_to_ptr.vmem [resolvable:$true] %s198_s13 }
  0x4f   :  { %v84_v12 = vsub.s32 0, %v83_v11  ;;  %v103_v13 = vsub.s32 2, %v83_v11  ;;  %v93_v14 = vsub.s32 1, %v83_v11  ;;  %s310_s14 = scalar_lea.vmem %s199_s13, 16  ;;  %s314_s15 = scalar_lea.vmem %s199_s13, 32 }
  0x50   :  { %p311_p4 = scmp.ne.s32.totalorder %s199_s13, %s310_s14  ;;  %p315_p5 = scmp.lt.s32.totalorder %s199_s13, %s199_s13 }
  0x51   :  { %220 = vset.pattern.permute.xlu1 %v345_v2  ;;  %218 = vset.pattern.permute.xlu0 %v346_v5  ;;  %v85_v17 = vrot.slane %v429_v15, %v84_v12  ;;  %v104_v18 = vrot.slane %v429_v15, %v103_v13  ;;  %v94_v19 = vrot.slane %v429_v15, %v93_v14  ;;  %p316_p6 = scmp.lt.s32.totalorder %s314_s15, %s310_s14 }
  0x52   :  { %109 = vperm.xlu1 %220, %v72_v4   ;;  %88 = vperm.xlu0 %218, %v71_v3  }
  0x53   :  { %p317_p7 = por %p316_p6, %p315_p5 }
  0x55   :  { %p318_p8 = pnand %p317_p7, %p311_p4 }
  0x56   :  { %116 = vperm.xlu1 %220, %v73_v6   ;;  %221 = vset.pattern.permute.xlu0 %v345_v2 }
  0x57   :  { %130 = vperm.xlu0 %221, %v74_v7  }
  0x5a   :  { %140 = vperm.xlu1 %220, %v75_v8  }
  0x5e   :  { %169 = vperm.xlu1 %220, %v76_v9  }
  0xcc   :  { %v80_v16 = vpop.permute.xlu0 %79  ;;  %v99_v20 = vpop.permute.xlu1 %98 }
  0xcd   :  { %v86_v22 = vmul.f32 %v85_v17, %v80_v16  ;;  %v105_v23 = vmul.f32 %v104_v18, %v99_v20 }
  0xd1   :  { %v89_v21 = vpop.permute.xlu0 %88  ;;  %v110_v26 = vpop.permute.xlu1 %109 }
  0xd2   :  { %v95_v24 = vmul.f32 %v94_v19, %v89_v21 }
  0xd4   :  { %v96_v25 = vadd.f32 %v95_v24, %v86_v22 }
  0xd5   :  { %v117_v30 = vpop.permute.xlu1 %116 }
  0xd6   :  { %v106_v27 = vadd.f32 %v105_v23, %v96_v25  ;;  %v131_v36 = vpop.permute.xlu0 %130 }
  0xd7   :  { %v136_v39 = vrot.slane %v131_v36, %v84_v12 }
  0xd8   :  { %v112_v28 = vadd.f32 %v110_v26, %v106_v27 }
  0xd9   :  { %v141_v42 = vpop.permute.xlu1 %140 }
  0xda   :  { %v113_v29 = vmax.f32 %v112_v28, 0.0 }
  0xdc   :  { %v119_v31 = vmul.f32 %v117_v30, %v113_v29 }
  0xdd   :  { %v170_v3 = vpop.permute.xlu1 %169 }
  0xde   :  { %v121_v32 = vsel %vm120_vm0, %v119_v31, 0.0 }
  0xdf   :  { %v122_v33 = vrot.slane %v121_v32, 4 }
  0xe1   :  { %v123_v34 = vadd.f32 %v122_v33, %v121_v32 }
  0xe3   :  { %v124_v35 = vrot.slane %v123_v34, 2 }
  0xe5   :  { %v125_v37 = vadd.f32 %v124_v35, %v123_v34 }
  0xe7   :  { %v126_v38 = vrot.slane %v125_v37, 1 }
  0xe9   :  { %v127_v40 = vadd.f32 %v126_v38, %v125_v37 }
  0xeb   :  { %v137_v41 = vadd.f32 %v136_v39, %v127_v40 }
  0xed   :  { %v143_v43 = vmul.f32 %v141_v42, %v137_v41 }
  0xef   :  { %v144_v44 = vadd.f32 %v143_v43, %v112_v28 }
  0xf1   :  { %v145_v45 = vmax.f32 %v144_v44, 0.0 }
  0xf3   :  { %v146_v46 = vmul.f32 %v145_v45, %v117_v30 }
  0xf5   :  { %v147_v47 = vsel %vm120_vm0, %v146_v46, 0.0 }
  0xf6   :  { %v148_v48 = vrot.slane %v147_v47, 4 }
  0xf8   :  { %v149_v49 = vadd.f32 %v148_v48, %v147_v47 }
  0xfa   :  { %v150_v50 = vrot.slane %v149_v49, 2 }
  0xfc   :  { %v151_v51 = vadd.f32 %v150_v50, %v149_v49 }
  0xfe   :  { %v152_v52 = vrot.slane %v151_v51, 1 }
 0x100   :  { %v153_v53 = vadd.f32 %v152_v52, %v151_v51 }
 0x102   :  { %v154_v54 = vadd.f32 %v153_v53, %v136_v39 }
 0x104   :  { %v155_v55 = vmul.f32 %v154_v54, %v141_v42 }
 0x106   :  { %v156_v56 = vadd.f32 %v155_v55, %v112_v28 }
 0x108   :  { %v157_v57 = vmax.f32 %v156_v56, 0.0 }
 0x10a   :  { %v158_v58 = vmul.f32 %v157_v57, %v117_v30 }
 0x10c   :  { %v159_v59 = vsel %vm120_vm0, %v158_v58, 0.0 }
 0x10d   :  { %v160_v60 = vrot.slane %v159_v59, 4 }
 0x10f   :  { %v161_v61 = vadd.f32 %v160_v60, %v159_v59 }
 0x111   :  { %v162_v62 = vrot.slane %v161_v61, 2 }
 0x113   :  { %v163_v63 = vadd.f32 %v162_v62, %v161_v61 }
 0x115   :  { %v164_v0 = vrot.slane %v163_v63, 1 }
 0x117   :  { %v165_v1 = vadd.f32 %v164_v0, %v163_v63 }
 0x119   :  { %v166_v2 = vadd.f32 %v165_v1, %v136_v39 }
 0x11b   :  { %v172_v4 = vmul.f32 %v170_v3, %v166_v2  ;;  %v184_v12 = vadd.f32 %v166_v2, %v154_v54 }
 0x11d   :  { %v173_v5 = vadd.f32 %v172_v4, %v112_v28  ;;  %v185_v16 = vmul.f32 2.0, %v184_v12 }
 0x11f   :  { %v174_v6 = vmax.f32 %v173_v5, 0.0  ;;  %v186_v19 = vadd.f32 %v185_v16, %v137_v41 }
 0x121   :  { %v175_v7 = vmul.f32 %v174_v6, %v117_v30 }
 0x123   :  { %v176_v8 = vsel %vm120_vm0, %v175_v7, 0.0 }
 0x124   :  { %v177_v9 = vrot.slane %v176_v8, 4 }
 0x126   :  { %v178_v10 = vadd.f32 %v177_v9, %v176_v8 }
 0x128   :  { %v179_v11 = vrot.slane %v178_v10, 2 }
 0x12a   :  { %v180_v13 = vadd.f32 %v179_v11, %v178_v10 }
 0x12c   :  { %v181_v14 = vrot.slane %v180_v13, 1 }
 0x12e   :  { %v182_v17 = vadd.f32 %v181_v14, %v180_v13 }
 0x130   :  { %v183_v18 = vadd.f32 %v182_v17, %v136_v39 }
 0x132   :  { %v187_v20 = vadd.f32 %v186_v19, %v183_v18 }
 0x134   :  { %v188_v21 = vmul.f32 0.041666668, %v187_v20 }
 0x136   :  { %v189_v22 = vadd.f32 %v188_v21, %v429_v15 }
 0x138   :  { %191 = vst.msk [vmem:[#allocation11] sm:$0x1] %vm190_vm1, %v189_v22 }
 0x139   :  { %321 = shalt.err (!%p318_p8)
}
 0x13a   :  { %s322_s17 = scalar_lea.hbm %s456_s5, 16 }
 0x13b   :  { %p323_p9 = scmp.ne.s32.totalorder %s456_s5, %s322_s17  ;;  %p326_p10 = scmp.lt.u32.totalorder %s322_s17, %s456_s5 }
 0x13d   :  { %p328_p11 = pnand %p326_p10, %p323_p9 }
 0x13f   :  { %331 = shalt.err (!%p328_p11)
}
 0x140   :  { %201 = dma.vmem_to_hbm [thread:$0]  %s199_s13, 16, %s456_s5, [#allocation5]  }
 0x141   :  { %338 = dma.done.wait [#allocation5], 16  }
 0x142   :  { %339 = vsyncadd [#allocation5], 4294967280 }
 0x143   :  { %205 = vsyncpa [#allocation4], 1 }
 0x144   :  { %206 = vsyncpa [#allocation7], 1 }
 0x145   :  { %207 = vsyncpa [#allocation10], 1 }
 0x146   :  { %208 = vsyncpa [#allocation5], 1 }

</bundles_post_ra>
